<compile_context>
chip_gen: v5e
topology: v5e:2x2
jax: 0.10.0
libtpu: 0.0.40
codegen_flags: <defaults>
</compile_context>

<pallas_src>
import functools
import math

import jax
import jax.numpy as jnp
from jax.experimental import pallas as pl
from jax.experimental.pallas import tpu as pltpu


def _gat_kernel(x_ref, adj_ref, waug_ref, out_ref, *,
                alpha, concat, mxu_dtype, exp_dtype, approx_recip, f_out):
    bb, n, f_in = x_ref.shape

    # --- (1) fused, lane-aligned projection -----------------------------------
    # One MXU pass over the flattened (bb*n, f_in) block computes
    #   hf = x @ [ W@a1 | W@a2 | 0...0 | W ]   (f1/f2 in lanes 0/1, W at lane 128)
    # so the h slice below starts on a 128-lane tile boundary (a view).
    x2d = x_ref[...].reshape(bb * n, f_in).astype(mxu_dtype)
    hf = jnp.dot(x2d, waug_ref[...].astype(mxu_dtype),
                 preferred_element_type=jnp.float32)            # (bb*n, 128 + f_out)

    f1 = hf[:, 0:1].reshape(bb, n, 1)                           # a1 . h[i]
    f2 = hf[:, 1:2].reshape(bb, n, 1)                           # a2 . h[j]
    h = hf[:, 128:].reshape(bb, n, f_out)                       # 128-aligned slice

    # --- (2) attention logits + LeakyReLU --------------------------------------
    e = f1 + jnp.swapaxes(f2, 1, 2)                             # (bb, n, n)
    e = jnp.where(e > 0, e, alpha * e)                          # LeakyReLU(alpha)

    # --- (3) masked softmax over the source-node axis (torch softmax dim=1) ----
    mask = adj_ref[...] > 0                                     # integer/f32 compare, no widen
    masked = jnp.where(mask, e, -1e12)
    m = jnp.max(masked, axis=1, keepdims=True)                  # (bb, 1, n)
    # bf16 exp on v6e/v7x (bf16 EUP, ~2x softmax throughput); f32 everywhere else.
    p = jnp.exp((masked - m).astype(exp_dtype)).astype(jnp.float32)
    colsum = jnp.sum(p, axis=1, keepdims=True)                  # (bb, 1, n)
    att = p * pl.reciprocal(colsum, approx=approx_recip)        # n recips + n^2 muls

    # TODO(synk): F.dropout on the attention matrix is skipped (inference mode,
    # training=False -> identity).

    # --- (4) aggregation + optional ReLU ----------------------------------------
    hp = jnp.einsum("bij,bjf->bif",
                    att.astype(mxu_dtype), h.astype(mxu_dtype),
                    preferred_element_type=jnp.float32)         # (bb, n, f_out)
    if concat:
        hp = jnp.maximum(hp, 0.0)
    out_ref[...] = hp.astype(out_ref.dtype)


# --------------------------- generation-aware sizing ---------------------------

def _device_kind():
    try:
        return jax.devices()[0].device_kind.lower()
    except Exception:
        return ""


def _vmem_capacity_bytes():
    try:
        return int(pltpu.get_tpu_info().vmem_capacity_bytes)
    except Exception:
        return 64 << 20   # conservative fallback (v7x-sized VMEM)


def _default_exp_dtype():
    # bf16 EUP exists on v6e/v7x; v5e has no bf16 VPU/EUP -> keep f32 there
    # (and on anything we cannot identify).
    kind = _device_kind()
    return jnp.bfloat16 if ("v6" in kind or "v7" in kind or "tpu7" in kind) else jnp.float32


def _num_tensorcores():
    # v7x has 2 TensorCores per chip; keep >=2 grid steps so "parallel" shards.
    kind = _device_kind()
    return 2 if ("v7" in kind or "tpu7" in kind) else 1


def _default_vmem_limit_bytes():
    # Raise the scoped-VMEM limit well above the 16/32 MiB defaults, leaving
    # headroom below physical (64 MiB on v7x, 128 MiB on v5e/v6e).
    return min(3 * _vmem_capacity_bytes() // 4, 100 << 20)


def _pick_batch_block(B, N, F_in, F_out, adj_itemsize):
    """Batch elements per grid step.

    Big enough to fill the MXU M dimension (~256 flattened rows) and amortise
    the ~0.35us/step pipeline overhead, small enough for a generation-aware
    VMEM budget, and never collapsing the grid below the TensorCore count.
    """
    cap = _vmem_capacity_bytes()
    budget = (24 << 20) if cap <= (64 << 20) else (48 << 20)    # v7x vs v5e/v6e

    rows_target = 256
    bb = max(1, min(B, rows_target // max(N, 1)))

    bytes_per_batch = (
        4 * 4 * N * N                      # ~4 live f32 (N, N) softmax temporaries
        + 2 * adj_itemsize * N * N         # double-buffered adj block
        + 2 * 4 * N * F_in                 # double-buffered x block
        + 4 * N * (128 + F_out)            # hf
        + 2 * 4 * N * F_out                # double-buffered out block
    )
    bb = max(1, min(bb, budget // max(bytes_per_batch, 1)))

    nc = _num_tensorcores()
    if nc > 1:
        bb = min(bb, max(1, B // nc))

    while B % bb:
        bb -= 1
    return bb


# ------------------------------------ wrapper -----------------------------------

def gat_forward(inp, adj, W, a, *, alpha=0.2, concat=True, batch_block=None,
                mxu_dtype=jnp.bfloat16, exp_dtype=None, approx_recip=None,
                vmem_limit_bytes=None):
    """Pallas-TPU forward of GraphAttentionLayer.

    inp: (B, N, F_in) f32.  adj: (B, N, N), any dtype where edges are > 0 —
    pass a pre-quantized int8/bool adjacency and reuse it across layers/calls
    to cut adj HBM traffic 4x (the >0 compare runs in-kernel either way; no
    per-call conversion pass is done here).
    mxu_dtype=bf16 is the fast path (f32 accumulation); mxu_dtype=f32 is the
    bit-faithful verification path (also forces exact exp / reciprocal).
    """
    B, N, F_in = inp.shape
    F_out = W.shape[1]
    assert a.shape == (2 * F_out, 1)

    fast = mxu_dtype != jnp.float32
    if approx_recip is None:
        approx_recip = fast                     # EUP vrcp on the fast path only
    if exp_dtype is None:
        exp_dtype = _default_exp_dtype() if fast else jnp.float32
    if vmem_limit_bytes is None:
        vmem_limit_bytes = _default_vmem_limit_bytes()

    if batch_block is None:
        # N % 8 == 0 keeps the in-kernel (bb, N, *) <-> (bb*N, *) reshapes
        # layout-trivial; otherwise fall back to one batch element per step.
        batch_block = (_pick_batch_block(B, N, F_in, F_out, adj.dtype.itemsize)
                       if N % 8 == 0 else 1)
    assert B % batch_block == 0, "batch_block must divide the batch size"
    grid = (B // batch_block,)

    # Lane-aligned fused weight: lanes [0,1] hold W@a1 / W@a2, lanes [2,128)
    # are zero padding (free on the MXU), W starts at lane 128 so the in-kernel
    # hf slices are tile-aligned views.
    a1, a2 = a[:F_out, :], a[F_out:, :]
    w_aug = jnp.concatenate(
        [W @ a1, W @ a2, jnp.zeros((F_in, 126), W.dtype), W], axis=1)  # (F_in, 128+F_out)

    kernel = functools.partial(
        _gat_kernel, alpha=alpha, concat=concat, mxu_dtype=mxu_dtype,
        exp_dtype=exp_dtype, approx_recip=approx_recip, f_out=F_out)

    # TODO(synk): for N >~ 1.5-2K the (N, N) attention block should be tiled
    # over the source-node axis (two-pass / online softmax) to bound VMEM
    # (mandatory on v7x's 64 MiB); multi-head fusion (>=128-lane output) and a
    # bit-packed adjacency are further bandwidth levers — unnecessary at these
    # sizes.
    return pl.pallas_call(
        kernel,
        out_shape=jax.ShapeDtypeStruct((B, N, F_out), jnp.float32),
        grid_spec=pltpu.PrefetchScalarGridSpec(
            num_scalar_prefetch=0,
            grid=grid,
            in_specs=[
                pl.BlockSpec((batch_block, N, F_in), lambda b: (b, 0, 0)),
                pl.BlockSpec((batch_block, N, N), lambda b: (b, 0, 0)),
                pl.BlockSpec((F_in, 128 + F_out), lambda b: (0, 0)),
            ],
            out_specs=pl.BlockSpec((batch_block, N, F_out), lambda b: (b, 0, 0)),
        ),
        compiler_params=pltpu.CompilerParams(
            dimension_semantics=("parallel",),
            vmem_limit_bytes=vmem_limit_bytes,
        ),
    )(inp, adj, w_aug)


# --------------------------------- references -----------------------------------

def _xavier_uniform(key, shape, gain):
    fan_in, fan_out = shape[0], shape[1]
    bound = gain * math.sqrt(6.0 / (fan_in + fan_out))
    return jax.random.uniform(key, shape, jnp.float32, minval=-bound, maxval=bound)


def _reference(inp, adj, W, a, alpha, concat):
    # Pure-JAX reference mirroring the PyTorch code's structure exactly.
    h = jnp.matmul(inp, W)                                         # (B, N, F_out)
    F_out = W.shape[1]
    e = (h @ a[:F_out, :]) + jnp.swapaxes(h @ a[F_out:, :], 1, 2)  # (B, N, N)
    e = jnp.where(e > 0, e, alpha * e)
    att = jax.nn.softmax(jnp.where(adj > 0, e, -1e12), axis=1)
    hp = jnp.matmul(att, h)
    return jnp.maximum(hp, 0.0) if concat else hp


def _mirror_reference(inp, adj, W, a, alpha, concat, mxu_dtype, exp_dtype=jnp.float32):
    # Pure-JAX mirror of the kernel's arithmetic (same fusion / association,
    # MXU-operand dtype and exp dtype) -> allows tight numerical tolerances.
    F_out = W.shape[1]
    a1, a2 = a[:F_out, :], a[F_out:, :]
    xm = inp.astype(mxu_dtype)
    h = jnp.matmul(xm, W.astype(mxu_dtype),
                   preferred_element_type=jnp.float32, precision="highest")
    f1 = jnp.matmul(xm, (W @ a1).astype(mxu_dtype),
                    preferred_element_type=jnp.float32, precision="highest")
    f2 = jnp.matmul(xm, (W @ a2).astype(mxu_dtype),
                    preferred_element_type=jnp.float32, precision="highest")
    e = f1 + jnp.swapaxes(f2, 1, 2)
    e = jnp.where(e > 0, e, alpha * e)
    masked = jnp.where(adj > 0, e, -1e12)
    m = jnp.max(masked, axis=1, keepdims=True)
    p = jnp.exp((masked - m).astype(exp_dtype)).astype(jnp.float32)
    att = p / jnp.sum(p, axis=1, keepdims=True)
    hp = jnp.matmul(att.astype(mxu_dtype), h.astype(mxu_dtype),
                    preferred_element_type=jnp.float32, precision="highest")
    return jnp.maximum(hp, 0.0) if concat else hp


if __name__ == "__main__":
    B, N = 2, 8
    in_features, out_features = 16, 32
    alpha, concat = 0.2, True

    key = jax.random.PRNGKey(0)
    k_w, k_a, k_x, k_adj = jax.random.split(key, 4)

    W = _xavier_uniform(k_w, (in_features, out_features), gain=1.414)
    a = _xavier_uniform(k_a, (2 * out_features, 1), gain=1.414)

    inp = jax.random.normal(k_x, (B, N, in_features), jnp.float32)
    adj = (jax.random.uniform(k_adj, (B, N, N)) > 0.4).astype(jnp.float32)
    # ensure every column has at least one edge (self-loops), like typical GAT usage
    adj = jnp.maximum(adj, jnp.eye(N, dtype=jnp.float32)[None])

    # Pre-quantized int8 adjacency: built once, reused across layers/calls
    # (4x less adj HBM traffic than shipping f32; no per-call conversion pass).
    adj_i8 = (adj > 0).astype(jnp.int8)

    # --- strict check: bit-faithful f32 path vs. a pure-JAX mirror ------------
    out_f32 = jax.block_until_ready(
        gat_forward(inp, adj, W, a, alpha=alpha, concat=concat,
                    mxu_dtype=jnp.float32))
    assert out_f32.shape == (B, N, out_features)
    mirror_f32 = _mirror_reference(inp, adj, W, a, alpha, concat, jnp.float32)
    assert jnp.allclose(out_f32, mirror_f32, atol=1e-3, rtol=1e-3), "f32 path mismatch"

    # Loose end-to-end check against the PyTorch-ordered reference (robust to
    # TPU reduced-precision matmul defaults interacting with the fused-weight
    # reassociation).
    ref = _reference(inp, adj, W, a, alpha, concat)
    assert jnp.allclose(out_f32, ref, atol=1e-1, rtol=1e-1), "semantic mismatch"

    # --- default fast path: bf16 MXU, EUP reciprocal, gen-aware exp dtype ------
    out = jax.block_until_ready(
        gat_forward(inp, adj_i8, W, a, alpha=alpha, concat=concat))
    assert out.shape == (B, N, out_features)
    mirror_fast = _mirror_reference(inp, adj, W, a, alpha, concat,
                                    jnp.bfloat16, exp_dtype=_default_exp_dtype())
    assert jnp.allclose(out, mirror_fast, atol=3e-2, rtol=3e-2), "bf16 path mismatch"

    print("KERNEL_OK")
</pallas_src>

<mosaic_0001>
module attributes {stable_mosaic.version = 11 : i64} {
  func.func @_gat_kernel(%arg0: i32, %arg1: memref<2x8x16xf32, #tpu.memory_space<vmem>>, %arg2: memref<2x8x8xf32, #tpu.memory_space<vmem>>, %arg3: memref<16x160xf32, #tpu.memory_space<vmem>>, %arg4: memref<2x8x32xf32, #tpu.memory_space<vmem>>) attributes {dimension_semantics = [#tpu.dimension_semantics<parallel>], iteration_bounds = array<i64: 1>, scalar_prefetch = 0 : i64, scratch_operands = 0 : i64, tpu.core_type = #tpu.core_type<tc>, window_params = [{transform_indices = @transform_0, window_bounds = array<i64: 2, 8, 16>}, {transform_indices = @transform_1, window_bounds = array<i64: 2, 8, 8>}, {pipeline_mode = #tpu.pipeline_mode<synchronous>, transform_indices = @transform_2, window_bounds = array<i64: 16, 160>}, {transform_indices = @transform_3, window_bounds = array<i64: 2, 8, 32>}]} {
    %c0 = arith.constant 0 : index
    %c0_0 = arith.constant 0 : index
    %c0_1 = arith.constant 0 : index
    %0 = vector.load %arg1[%c0, %c0_0, %c0_1] : memref<2x8x16xf32, #tpu.memory_space<vmem>>, vector<2x8x16xf32>
    %1 = vector.shape_cast %0 : vector<2x8x16xf32> to vector<16x16xf32>
    %c0_2 = arith.constant 0 : index
    %c0_3 = arith.constant 0 : index
    %2 = vector.load %arg3[%c0_2, %c0_3] : memref<16x160xf32, #tpu.memory_space<vmem>>, vector<16x160xf32>
    %cst = arith.constant dense<0.000000e+00> : vector<16x160xf32>
    %3 = tpu.matmul %1, %2, %cst {dimension_numbers = #tpu.dot_dimension_numbers<[1], [0], [0], [1], [0, 0, 1, 1], [], []>} : vector<16x16xf32>, vector<16x160xf32>, vector<16x160xf32> -> vector<16x160xf32>
    %4 = vector.extract_strided_slice %3 {offsets = [0, 0], sizes = [16, 1], strides = [1, 1]} : vector<16x160xf32> to vector<16x1xf32>
    %5 = vector.shape_cast %4 : vector<16x1xf32> to vector<2x8x1xf32>
    %6 = vector.extract_strided_slice %3 {offsets = [0, 1], sizes = [16, 1], strides = [1, 1]} : vector<16x160xf32> to vector<16x1xf32>
    %7 = vector.shape_cast %6 : vector<16x1xf32> to vector<2x8x1xf32>
    %8 = vector.extract_strided_slice %3 {offsets = [0, 128], sizes = [16, 32], strides = [1, 1]} : vector<16x160xf32> to vector<16x32xf32>
    %9 = vector.shape_cast %8 : vector<16x32xf32> to vector<2x8x32xf32>
    %10 = tpu.transpose %7, [0, 2, 1] : vector<2x8x1xf32> -> vector<2x1x8xf32>
    %11 = vector.broadcast %5 : vector<2x8x1xf32> to vector<2x8x8xf32>
    %12 = vector.broadcast %10 : vector<2x1x8xf32> to vector<2x8x8xf32>
    %13 = arith.addf %11, %12 : vector<2x8x8xf32>
    %cst_4 = arith.constant 0.000000e+00 : f32
    %14 = vector.broadcast %cst_4 : f32 to vector<2x8x8xf32>
    %15 = arith.cmpf ogt, %13, %14 : vector<2x8x8xf32>
    %cst_5 = arith.constant 2.000000e-01 : f32
    %16 = vector.broadcast %cst_5 : f32 to vector<2x8x8xf32>
    %17 = arith.mulf %16, %13 : vector<2x8x8xf32>
    %18 = arith.select %15, %13, %17 : vector<2x8x8xi1>, vector<2x8x8xf32>
    %c0_6 = arith.constant 0 : index
    %c0_7 = arith.constant 0 : index
    %c0_8 = arith.constant 0 : index
    %19 = vector.load %arg2[%c0_6, %c0_7, %c0_8] : memref<2x8x8xf32, #tpu.memory_space<vmem>>, vector<2x8x8xf32>
    %cst_9 = arith.constant 0.000000e+00 : f32
    %20 = vector.broadcast %cst_9 : f32 to vector<2x8x8xf32>
    %21 = arith.cmpf ogt, %19, %20 : vector<2x8x8xf32>
    %cst_10 = arith.constant -9.99999995E+11 : f32
    %22 = vector.broadcast %cst_10 : f32 to vector<2x8x8xf32>
    %23 = arith.select %21, %18, %22 : vector<2x8x8xi1>, vector<2x8x8xf32>
    %cst_11 = arith.constant dense<0xFF800000> : vector<2x8xf32>
    %24 = vector.multi_reduction <maximumf>, %23, %cst_11 [1] : vector<2x8x8xf32> to vector<2x8xf32>
    %25 = vector.shape_cast %24 : vector<2x8xf32> to vector<2x1x8xf32>
    %26 = vector.broadcast %25 : vector<2x1x8xf32> to vector<2x8x8xf32>
    %27 = arith.subf %23, %26 : vector<2x8x8xf32>
    %28 = math.exp %27 : vector<2x8x8xf32>
    %cst_12 = arith.constant dense<0.000000e+00> : vector<2x8xf32>
    %29 = vector.multi_reduction <add>, %28, %cst_12 [1] : vector<2x8x8xf32> to vector<2x8xf32>
    %30 = vector.shape_cast %29 : vector<2x8xf32> to vector<2x1x8xf32>
    %31 = tpu.reciprocal %30 : vector<2x1x8xf32> -> vector<2x1x8xf32>
    %32 = vector.broadcast %31 : vector<2x1x8xf32> to vector<2x8x8xf32>
    %33 = arith.mulf %28, %32 : vector<2x8x8xf32>
    "tpu.trace_start"() <{level = 10 : i32, message = "bij,bjf->bif"}> : () -> ()
    %cst_13 = arith.constant dense<0.000000e+00> : vector<2x8x32xf32>
    %34 = tpu.matmul %33, %9, %cst_13 {dimension_numbers = #tpu.dot_dimension_numbers<[2], [1], [1], [2], [0, 0, 0, 1, 1, 2], [0], [0]>} : vector<2x8x8xf32>, vector<2x8x32xf32>, vector<2x8x32xf32> -> vector<2x8x32xf32>
    "tpu.trace_stop"() : () -> ()
    %cst_14 = arith.constant 0.000000e+00 : f32
    %35 = vector.broadcast %cst_14 : f32 to vector<2x8x32xf32>
    %36 = arith.maximumf %34, %35 : vector<2x8x32xf32>
    %c0_15 = arith.constant 0 : index
    %c0_16 = arith.constant 0 : index
    %c0_17 = arith.constant 0 : index
    %37 = vector.load %arg4[%c0_15, %c0_16, %c0_17] : memref<2x8x32xf32, #tpu.memory_space<vmem>>, vector<2x8x32xf32>
    tpu.vector_store %arg4[%c0_15, %c0_16, %c0_17], %36 {strides = array<i32>} : memref<2x8x32xf32, #tpu.memory_space<vmem>>, vector<2x8x32xf32>,
    return
  }
  func.func @transform_0(%arg0: i32) -> (i32, i32, i32) {
    %c0_i32 = arith.constant 0 : i32
    %c0_i32_0 = arith.constant 0 : i32
    %c0_i32_1 = arith.constant 0 : i32
    return %arg0, %c0_i32, %c0_i32_0 : i32, i32, i32
  }
  func.func @transform_1(%arg0: i32) -> (i32, i32, i32) {
    %c0_i32 = arith.constant 0 : i32
    %c0_i32_0 = arith.constant 0 : i32
    %c0_i32_1 = arith.constant 0 : i32
    return %arg0, %c0_i32, %c0_i32_0 : i32, i32, i32
  }
  func.func @transform_2(%arg0: i32) -> (i32, i32) {
    %c0_i32 = arith.constant 0 : i32
    %c0_i32_0 = arith.constant 0 : i32
    %c0_i32_1 = arith.constant 0 : i32
    return %c0_i32, %c0_i32_0 : i32, i32
  }
  func.func @transform_3(%arg0: i32) -> (i32, i32, i32) {
    %c0_i32 = arith.constant 0 : i32
    %c0_i32_0 = arith.constant 0 : i32
    %c0_i32_1 = arith.constant 0 : i32
    return %arg0, %c0_i32, %c0_i32_0 : i32, i32, i32
  }
}

</mosaic_0001>

<bundles_post_ra>
// kernel: tpu_custom_call.1
= control target key start
LH: loop header
LB: loop body
LE: loop exit
PB: predicated region body
PF: predicated region fallthrough
CT: control target
= control target key end

     0   :  { %8 = vsyncpa [#allocation3], 0  ;;  %s543_s0 = inlined_call_operand.hbm [shape: f32[2,8,16], index: 0, kind: input, shape index: {}]   ;;  %s544_s1 = inlined_call_operand.hbm [shape: f32[2,8,8], index: 1, kind: input, shape index: {}]   ;;  %s545_s2 = inlined_call_operand.hbm [shape: f32[16,160], index: 2, kind: input, shape index: {}]   ;;  %s546_s3 = inlined_call_operand.hbm [shape: f32[2,8,32], index: 3, kind: output, shape index: {}]  }
   0x1   :  { %9 = vsyncpa [#allocation6], 0 }
   0x2   :  { %10 = vsyncpa [#allocation4], 0  ;;  %s28_s14 = sshll.u32 %s544_s1, 4  ;;  %s482_s15 = smov [#allocation5]   ;;  %s29_s14 = int_to_ptr.hbm [resolvable:$true] %s28_s14 }
   0x3   :  { %s30_s16 = sshll.u32 %s482_s15, 4  ;;  %s15_s19 = sshll.u32 %s543_s0, 4  ;;  %s31_s16 = int_to_ptr.vmem [resolvable:$true] %s30_s16  ;;  %s16_s19 = int_to_ptr.hbm [resolvable:$true] %s15_s19 }
   0x4   :  { %s483_s20 = smov 128   ;;  %s484_s21 = smov 8  }
   0x5   :  { %36 = dma.hbm_to_vmem [thread:$0]  %s29_s14, 256, %s31_s16, [#allocation6], %s483_s20, %s483_s20, %s484_s21  }
   0x6   :  { %s485_s22 = smov [#allocation2]   ;;  %s41_s1 = sshll.u32 %s545_s2, 4  ;;  %s42_s1 = int_to_ptr.hbm [resolvable:$true] %s41_s1 }
   0x7   :  { %s17_s23 = sshll.u32 %s485_s22, 4  ;;  %s486_s0 = smov [#allocation7]   ;;  %s18_s23 = int_to_ptr.vmem [resolvable:$true] %s17_s23 }
   0x8   :  { %23 = dma.hbm_to_vmem [thread:$0]  %s16_s19, 256, %s18_s23, [#allocation3], %s483_s20, %s483_s20, %s484_s21  }
   0x9   :  { %s43_s26 = sshll.u32 %s486_s0, 4  ;;  %s487_s27 = smov 256   ;;  %s44_s26 = int_to_ptr.vmem [resolvable:$true] %s43_s26 }
   0xa   :  { %s488_s28 = smov 16  }
   0xb   :  { %49 = dma.hbm_to_vmem [thread:$0]  %s42_s1, 512, %s44_s26, [#allocation6], %s487_s27, %s487_s27, %s488_s28  }
   0xc   :  { %476 = dma.done.wait [#allocation3], 256  }
   0xd   :  { %477 = vsyncadd [#allocation3], 4294967040 }
   0xe   :  { %478 = dma.done.wait [#allocation6], 768  }
   0xf   :  { %479 = vsyncadd [#allocation6], 4294966528  ;;  %v489_v0 = vmov 0   ;;  %v66_v1 = vld [vmem:[#allocation7 + $0x10] sm:$0xff]  ;;  %v64_v2 = vld [vmem:[#allocation7] sm:$0xff]  ;;  %vm68_vm0 = vcmask 130048  }
  0x10   :  { %370 = vset.pattern.permute.xlu1 %v489_v0  ;;  %371 = vset.pattern.permute.xlu0 %v489_v0  ;;  %v62_v3 = vld [vmem:[#allocation2] sm:$0xff]  ;;  %v63_v4 = vld [vmem:[#allocation2 + $0x8] sm:$0xff]  ;;  %s490_s2 = smov 127   ;;  %v67_v7 = vld [vmem:[#allocation7 + $0x18] sm:$0xff]  ;;  %vm217_vm3 = vcmask 64512   ;;  %vm330_vm14 = vcmask 261120  }
  0x11   :  { %89 = vmatpush.msra.mxu0 %v66_v1  ;;  %v65_v8 = vld [vmem:[#allocation7 + $0x8] sm:$0xff]  ;;  %112 = vmatpush.msra.mxu1 %v67_v7  ;;  %v211_v14 = vld [vmem:[#allocation5] sm:$0xff]  ;;  %v212_v23 = vld [vmem:[#allocation5 + $0x8] sm:$0xff]  ;;  %s491_s29 = smov [#allocation8]   ;;  %s339_s6 = sshll.u32 %s546_s3, 4  ;;  %s340_s6 = int_to_ptr.hbm [resolvable:$true] %s339_s6 }
  0x12   :  { %vm213_vm1 = vcmp.gt.f32.partialorder %v211_v14, 0.0  ;;  %vm214_vm4 = vcmp.gt.f32.partialorder %v212_v23, 0.0  ;;  %s337_s30 = sshll.u32 %s491_s29, 4  ;;  %s338_s30 = int_to_ptr.vmem [resolvable:$true] %s337_s30 }
  0x13   :  { %90 = vmatpush.msra.mxu0 %v64_v2  ;;  %113 = vmatpush.msra.mxu1 %v65_v8 }
  0x14   :  { %353 = vmatmul.msk.f32.vlgmr.msra.gmra.mxu0 %vm68_vm0, %v62_v3  ;;  %355 = vmatmul.msk.f32.vlgmr.msra.gmra.mxu1 %vm68_vm0, %v62_v3 }
  0x1c   :  { %354 = vmatmul.msk.f32.gmra.mxu0 %vm68_vm0, %v63_v4  ;;  %356 = vmatmul.msk.f32.gmra.mxu1 %vm68_vm0, %v63_v4 }
  0x91   :  { %v92_v5 = vpop.f32.mrf.mxu0  ;;  %v115_v34 = vpop.f32.mrf.mxu1 }
  0x92   :  { %194 = vperm.xlu1 %370, %v92_v5   ;;  %123 = vrot.lane.b32.xlu0 %v92_v5, %s490_s2 }
  0x93   :  { %300 = vmatpush.msra.mxu2 %v115_v34 }
  0x99   :  { %v95_v6 = vpop.f32.mrf.mxu0  ;;  %v118_v48 = vpop.f32.mrf.mxu1 }
  0x9a   :  { %198 = vperm.xlu1 %370, %v95_v6   ;;  %125 = vrot.lane.b32.xlu0 %v95_v6, %s490_s2 }
  0x9b   :  { %323 = vmatpush.msra.mxu3 %v118_v48 }
 0x104   :  { %v124_v9 = vpop.permute.xlu0 %123  ;;  %v195_v11 = vpop.permute.xlu1 %194 }
 0x105   :  { %129 = vxpose.xlu2.b32.start.end [1/1] (short) (narrow) %v124_v9, 8 }
 0x10c   :  { %v126_v10 = vpop.permute.xlu0 %125  ;;  %v199_v22 = vpop.permute.xlu1 %198 }
 0x10d   :  { %161 = vxpose.xlu2.b32.start.end [1/1] (short) (narrow) %v126_v10, 8 }
 0x19e   :  { %v145_v12 = vpop.trf.xlu2 }
 0x19f   :  { %v201_v13 = vperm.slane %v145_v12, 0 }
 0x1a1   :  { %v203_v15 = vadd.f32 %v201_v13, %v195_v11 }
 0x1a3   :  { %vm205_vm2 = vcmp.gt.f32.partialorder %v203_v15, 0.0  ;;  %v207_v16 = vmul.f32 0.2, %v203_v15 }
 0x1a5   :  { %v209_v17 = vsel %vm205_vm2, %v203_v15, %v207_v16 }
 0x1a6   :  { %v215_v18 = vsel %vm213_vm1, %v209_v17, -1e+12  ;;  %v177_v19 = vpop.trf.xlu2 }
 0x1a7   :  { %v202_v20 = vperm.slane %v177_v19, 0  ;;  %v218_v21 = vsel %vm217_vm3, %v215_v18, -inf }
 0x1a8   :  { %v219_v24 = vrot.slane %v218_v21, 4 }
 0x1a9   :  { %v204_v25 = vadd.f32 %v202_v20, %v199_v22 }
 0x1aa   :  { %v220_v26 = vmax.f32 %v218_v21, %v219_v24 }
 0x1ab   :  { %vm206_vm5 = vcmp.gt.f32.partialorder %v204_v25, 0.0  ;;  %v208_v27 = vmul.f32 0.2, %v204_v25 }
 0x1ac   :  { %v221_v28 = vrot.slane %v220_v26, 2 }
 0x1ad   :  { %v210_v29 = vsel %vm206_vm5, %v204_v25, %v208_v27 }
 0x1ae   :  { %v216_v30 = vsel %vm214_vm4, %v210_v29, -1e+12  ;;  %v222_v31 = vmax.f32 %v220_v26, %v221_v28 }
 0x1af   :  { %v225_v32 = vsel %vm217_vm3, %v216_v30, -inf }
 0x1b0   :  { %v226_v33 = vrot.slane %v225_v32, 4  ;;  %v223_v35 = vrot.slane %v222_v31, 1 }
 0x1b2   :  { %v227_v36 = vmax.f32 %v225_v32, %v226_v33  ;;  %v224_v37 = vmax.f32 %v222_v31, %v223_v35 }
 0x1b4   :  { %v228_v38 = vrot.slane %v227_v36, 2  ;;  %v232_v39 = vsub.f32 %v215_v18, %v224_v37 }
 0x1b6   :  { %v229_v40 = vmax.f32 %v227_v36, %v228_v38  ;;  %v234_v41 = vmul.f32 1.442695, %v232_v39 }
 0x1b8   :  { %v230_v42 = vrot.slane %v229_v40, 1  ;;  %372 = vpow2.f32 %v234_v41 }
 0x1ba   :  { %v231_v43 = vmax.f32 %v229_v40, %v230_v42 }
 0x1bc   :  { %v233_v44 = vsub.f32 %v216_v30, %v231_v43 }
 0x1be   :  { %v373_v45 = vpop.eup %372  ;;  %v236_v46 = vmul.f32 1.442695, %v233_v44 }
 0x1bf   :  { %v238_v47 = vsel %vm217_vm3, %v373_v45, 0.0 }
 0x1c0   :  { %374 = vpow2.f32 %v236_v46  ;;  %v239_v49 = vrot.slane %v238_v47, 4 }
 0x1c2   :  { %v240_v50 = vadd.f32 %v239_v49, %v238_v47 }
 0x1c4   :  { %v241_v51 = vrot.slane %v240_v50, 2 }
 0x1c6   :  { %v375_v52 = vpop.eup %374  ;;  %v242_v53 = vadd.f32 %v241_v51, %v240_v50 }
 0x1c7   :  { %v245_v54 = vsel %vm217_vm3, %v375_v52, 0.0 }
 0x1c8   :  { %v246_v55 = vrot.slane %v245_v54, 4  ;;  %v243_v56 = vrot.slane %v242_v53, 1 }
 0x1ca   :  { %v247_v57 = vadd.f32 %v246_v55, %v245_v54  ;;  %v244_v58 = vadd.f32 %v243_v56, %v242_v53 }
 0x1cc   :  { %v248_v59 = vrot.slane %v247_v57, 2  ;;  %376 = vrcp.f32 %v244_v58  ;;  %v263_v2 = vand.u32 2147483648, %v244_v58  ;;  %v261_v4 = vand.u32 2147483647, %v244_v58 }
 0x1cd   :  { %vm257_vm7 = vweird.f32 %v244_v58 }
 0x1ce   :  { %v249_v60 = vadd.f32 %v248_v59, %v247_v57  ;;  %v264_v7 = vor.u32 1.1754944e-38, %v263_v2  ;;  %vm262_vm9 = vcmp.eq.f32.partialorder %v261_v4, 8.507059e+37 }
 0x1d0   :  { %v250_v61 = vrot.slane %v249_v60, 1 }
 0x1d2   :  { %v377_v62 = vpop.eup %376  ;;  %v251_v63 = vadd.f32 %v250_v61, %v249_v60 }
 0x1d3   :  { %v253_v0 = vmul.f32 %v377_v62, %v244_v58  ;;  %vm258_vm6 = vweird.f32 %v377_v62 }
 0x1d4   :  { %378 = vrcp.f32 %v251_v63  ;;  %vm259_vm8 = vmor %vm257_vm7, %vm258_vm6  ;;  %v277_v13 = vand.u32 2147483648, %v251_v63  ;;  %v275_v15 = vand.u32 2147483647, %v251_v63  ;;  %vm271_vm11 = vweird.f32 %v251_v63 }
 0x1d5   :  { %v254_v1 = vsub.f32 1.0, %v253_v0 }
 0x1d6   :  { %v278_v17 = vor.u32 1.1754944e-38, %v277_v13  ;;  %vm276_vm13 = vcmp.eq.f32.partialorder %v275_v15, 8.507059e+37 }
 0x1d7   :  { %v255_v3 = vmul.f32 %v377_v62, %v254_v1 }
 0x1d9   :  { %v256_v5 = vadd.f32 %v377_v62, %v255_v3 }
 0x1da   :  { %v379_v6 = vpop.eup %378 }
 0x1db   :  { %v260_v8 = vsel %vm259_vm8, %v377_v62, %v256_v5  ;;  %v267_v9 = vmul.f32 %v379_v6, %v251_v63  ;;  %vm272_vm10 = vweird.f32 %v379_v6 }
 0x1dc   :  { %v265_v10 = vsel %vm262_vm9, %v264_v7, %v260_v8  ;;  %vm273_vm12 = vmor %vm271_vm11, %vm272_vm10 }
 0x1dd   :  { %v280_v11 = vmul.f32 %v373_v45, %v265_v10  ;;  %v268_v12 = vsub.f32 1.0, %v267_v9 }
 0x1df   :  { %357 = vmatmul.msk.f32.vlgmr.msra.gmra.mxu2 %vm217_vm3, %v280_v11  ;;  %v269_v14 = vmul.f32 %v379_v6, %v268_v12 }
 0x1e1   :  { %v270_v16 = vadd.f32 %v379_v6, %v269_v14 }
 0x1e3   :  { %v274_v18 = vsel %vm273_vm12, %v379_v6, %v270_v16 }
 0x1e4   :  { %v279_v19 = vsel %vm276_vm13, %v278_v17, %v274_v18 }
 0x1e5   :  { %v281_v20 = vmul.f32 %v375_v52, %v279_v19 }
 0x1e7   :  { %358 = vmatmul.msk.f32.vlgmr.msra.gmra.mxu3 %vm217_vm3, %v281_v20 }
 0x262   :  { %v302_v21 = vpop.f32.mrf.mxu2 }
 0x263   :  { %v328_v22 = vmax.f32 %v302_v21, 0.0 }
 0x265   :  { %331 = vst.msk [vmem:[#allocation8] sm:$0xff] %vm330_vm14, %v328_v22 }
 0x26a   :  { %v325_v23 = vpop.f32.mrf.mxu3 }
 0x26b   :  { %v329_v24 = vmax.f32 %v325_v23, 0.0 }
 0x26d   :  { %332 = vst.msk [vmem:[#allocation8 + $0x8] sm:$0xff] %vm330_vm14, %v329_v24 }
 0x26e   :  { %345 = dma.vmem_to_hbm [thread:$0]  %s338_s30, 256, %s340_s6, [#allocation4], %s483_s20, %s483_s20, %s484_s21  }
 0x26f   :  { %480 = dma.done.wait [#allocation4], 256  }
 0x270   :  { %481 = vsyncadd [#allocation4], 4294967040 }
 0x271   :  { %350 = vsyncpa [#allocation3], 1 }
 0x272   :  { %351 = vsyncpa [#allocation6], 1 }
 0x273   :  { %352 = vsyncpa [#allocation4], 1 }

</bundles_post_ra>
